<compile_context>
chip_gen: v6e
topology: v6e:2x2x1
jax: 0.10.0
libtpu: 0.0.40
codegen_flags: <defaults>
</compile_context>

<pallas_src>
import functools

import jax
import jax.numpy as jnp
from jax.experimental import pallas as pl
from jax.experimental.pallas import tpu as pltpu

INI_NORMAL_VARIANCE = 0.1   # `ini_normal_variance` in modules.py
LEAKY_SLOPE = 0.2
LANE = 128
BF16_PACK = 16              # bf16 packs 16 rows per vreg


def _round_up(x, m):
    return ((x + m - 1) // m) * m


def _leaky_relu(x, slope=LEAKY_SLOPE):
    return jnp.where(x > 0, x, slope * x)


def _pad2d(a, rows, cols):
    return jnp.pad(a, ((0, rows - a.shape[0]), (0, cols - a.shape[1])))


def predictor_kernel(x_ref, w1_ref, b1_ref, w2_ref, b2_ref, w3_ref, b3_ref,
                     o_ref, *, bf16_epilogue):
    """Fused 3-layer MLP for one [tb, in_size] batch tile.

    Matmuls run on the MXU in bf16 with f32 accumulation; bias-add stays f32;
    the LeakyReLU epilogue is bf16 on chips with a bf16 VPU (v6e/v7x).
    """
    x = x_ref[...].astype(jnp.bfloat16)   # in-kernel cast, hidden under the MXU work

    # Layer 1: Linear + LeakyReLU(0.2)
    h1 = jnp.dot(x, w1_ref[...], preferred_element_type=jnp.float32) + b1_ref[...]
    if bf16_epilogue:
        h1 = _leaky_relu(h1.astype(jnp.bfloat16))
    else:
        h1 = _leaky_relu(h1).astype(jnp.bfloat16)
    # TODO(synk): training-mode Dropout(0.1) (pltpu.prng_seed + prng_random_bits
    # mask) intentionally omitted; this kernel implements eval semantics.

    # Layer 2: Linear + LeakyReLU(0.2)
    h2 = jnp.dot(h1, w2_ref[...], preferred_element_type=jnp.float32) + b2_ref[...]
    if bf16_epilogue:
        h2 = _leaky_relu(h2.astype(jnp.bfloat16))
    else:
        h2 = _leaky_relu(h2).astype(jnp.bfloat16)

    # Layer 3: Linear (no activation)
    y = jnp.dot(h2, w3_ref[...], preferred_element_type=jnp.float32) + b3_ref[...]
    o_ref[...] = y.astype(o_ref.dtype)


def _default_bf16_epilogue():
    # v5e has no bf16 VALU -> keep the f32 epilogue there.
    try:
        kind = jax.devices()[0].device_kind.lower()
        return "v5" not in kind
    except Exception:
        return True


def _batch_tiling(B, block_batch):
    if B <= BF16_PACK:
        tb = _round_up(B, BF16_PACK)
    elif B <= 2 * block_batch:
        # At least 2 tiles so the "parallel" batch axis feeds both v7x TCs.
        tb = _round_up(-(-B // 2), BF16_PACK)
    else:
        tb = block_batch
    b_p = _round_up(B, tb)
    return tb, b_p, b_p // tb


def predictor_forward(x, params, *, block_batch=512, bf16_epilogue=None):
    """x: [B, input_size] float32. params: dict of w1,b1,w2,b2,w3,b3 (f32).

    Weights are stored pre-transposed as [in, out] relative to nn.Linear.
    """
    w1, b1 = params["w1"], params["b1"]
    w2, b2 = params["w2"], params["b2"]
    w3, b3 = params["w3"], params["b3"]

    B, in_size = x.shape
    h1_size, h2_size, out_size = w1.shape[1], w2.shape[1], w3.shape[1]

    if bf16_epilogue is None:
        bf16_epilogue = _default_bf16_epilogue()

    # Hidden dims padded to 128 lanes so the intermediates are lane-dense; x's
    # K dim and the final output width keep their true sizes (full-dim blocks),
    # avoiding HBM-side pad round trips on the big input/output streams.
    h1_p = _round_up(h1_size, LANE)
    h2_p = _round_up(h2_size, LANE)

    tb, b_p, n_tiles = _batch_tiling(B, block_batch)

    xp = x if b_p == B else jnp.pad(x, ((0, b_p - B), (0, 0)))   # rows only, stays f32
    w1p = _pad2d(w1, in_size, h1_p).astype(jnp.bfloat16)
    w2p = _pad2d(w2, h1_p, h2_p).astype(jnp.bfloat16)
    w3p = _pad2d(w3, h2_p, out_size).astype(jnp.bfloat16)
    b1p = _pad2d(b1, 1, h1_p)
    b2p = _pad2d(b2, 1, h2_p)
    b3p = b3

    def resident(shape):
        # Constant block index -> stays VMEM-resident across all batch tiles;
        # Buffered(1) drops the useless second pipeline buffer.
        idx = lambda i: (0, 0)
        try:
            return pl.BlockSpec(shape, idx, pipeline_mode=pl.Buffered(1))
        except TypeError:  # older jax without pipeline_mode on BlockSpec
            return pl.BlockSpec(shape, idx)

    # VMEM budget: single-buffered bf16 weights + f32 biases, double-buffered
    # x/out tiles (f32), f32 intermediates; 2x slack, 4 MiB floor.
    weight_bytes = 2 * (in_size * h1_p + h1_p * h2_p + h2_p * out_size)
    bias_bytes = 4 * (h1_p + h2_p + out_size)
    io_bytes = 2 * (tb * in_size * 4 + tb * out_size * 4)
    interm_bytes = tb * (h1_p + h2_p) * 4
    vmem_limit = int(min(
        max(4 << 20, 2 * (weight_bytes + bias_bytes + io_bytes + interm_bytes)),
        64 << 20))

    y = pl.pallas_call(
        functools.partial(predictor_kernel, bf16_epilogue=bf16_epilogue),
        out_shape=jax.ShapeDtypeStruct((b_p, out_size), jnp.float32),
        grid=(n_tiles,),
        in_specs=[
            pl.BlockSpec((tb, in_size), lambda i: (i, 0)),   # x tile (f32, unpadded cols)
            resident((in_size, h1_p)),                        # w1
            resident((1, h1_p)),                              # b1
            resident((h1_p, h2_p)),                           # w2
            resident((1, h2_p)),                              # b2
            resident((h2_p, out_size)),                       # w3
            resident((1, out_size)),                          # b3
        ],
        out_specs=pl.BlockSpec((tb, out_size), lambda i: (i, 0)),
        compiler_params=pltpu.CompilerParams(
            dimension_semantics=("parallel",),
            vmem_limit_bytes=vmem_limit,
        ),
    )(xp, w1p, b1p, w2p, b2p, w3p, b3p)

    return y if b_p == B else y[:B]


def init_params(key, input_size, hidden_size1, hidden_size2, output_size):
    """Init mimicking Predictor._initialize_weights: weights ~ N(0, 0.1),
    small biases. Weights stored transposed ([in, out]) vs nn.Linear's [out, in]."""
    k1, k2, k3, kb1, kb2, kb3 = jax.random.split(key, 6)
    return {
        "w1": jax.random.normal(k1, (input_size, hidden_size1), jnp.float32)
              * INI_NORMAL_VARIANCE,
        "b1": jax.random.normal(kb1, (1, hidden_size1), jnp.float32) * 0.01,
        "w2": jax.random.normal(k2, (hidden_size1, hidden_size2), jnp.float32)
              * INI_NORMAL_VARIANCE,
        "b2": jax.random.normal(kb2, (1, hidden_size2), jnp.float32) * 0.01,
        "w3": jax.random.normal(k3, (hidden_size2, output_size), jnp.float32)
              * INI_NORMAL_VARIANCE,
        "b3": jax.random.normal(kb3, (1, output_size), jnp.float32) * 0.01,
    }


def predictor_reference(x, params):
    """Plain-JAX f32 reference for correctness check."""
    h1 = _leaky_relu(x @ params["w1"] + params["b1"])
    h2 = _leaky_relu(h1 @ params["w2"] + params["b2"])
    return h2 @ params["w3"] + params["b3"]


if __name__ == "__main__":
    # Small shapes consistent with the module: batch=8, input=32, h1=64, h2=48, out=16
    batch, input_size, hidden1, hidden2, output_size = 8, 32, 64, 48, 16

    key = jax.random.PRNGKey(0)
    kx, kp = jax.random.split(key)
    x = jax.random.normal(kx, (batch, input_size), jnp.float32)
    params = init_params(kp, input_size, hidden1, hidden2, output_size)

    fwd = jax.jit(functools.partial(predictor_forward, block_batch=512))
    out = jax.block_until_ready(fwd(x, params))

    ref = predictor_reference(x, params)
    assert out.shape == (batch, output_size), out.shape
    # bf16 MXU inputs with f32 accumulation -> loosened tolerance vs f32 reference.
    assert jnp.allclose(out, ref, atol=5e-2, rtol=5e-2), "mismatch vs reference"

    print("KERNEL_OK")
</pallas_src>

<mosaic_0001>
module attributes {stable_mosaic.version = 11 : i64} {
  func.func @predictor_kernel(%arg0: i32, %arg1: memref<16x32xf32, #tpu.memory_space<vmem>>, %arg2: memref<32x128xbf16, #tpu.memory_space<vmem>>, %arg3: memref<1x128xf32, #tpu.memory_space<vmem>>, %arg4: memref<128x128xbf16, #tpu.memory_space<vmem>>, %arg5: memref<1x128xf32, #tpu.memory_space<vmem>>, %arg6: memref<128x16xbf16, #tpu.memory_space<vmem>>, %arg7: memref<1x16xf32, #tpu.memory_space<vmem>>, %arg8: memref<16x16xf32, #tpu.memory_space<vmem>>) attributes {dimension_semantics = [#tpu.dimension_semantics<parallel>], iteration_bounds = array<i64: 1>, scalar_prefetch = 0 : i64, scratch_operands = 0 : i64, tpu.core_type = #tpu.core_type<tc>, window_params = [{transform_indices = @transform_0, window_bounds = array<i64: 16, 32>}, {pipeline_mode = #tpu.pipeline_mode<synchronous>, transform_indices = @transform_1, window_bounds = array<i64: 32, 128>}, {pipeline_mode = #tpu.pipeline_mode<synchronous>, transform_indices = @transform_2, window_bounds = array<i64: 1, 128>}, {pipeline_mode = #tpu.pipeline_mode<synchronous>, transform_indices = @transform_3, window_bounds = array<i64: 128, 128>}, {pipeline_mode = #tpu.pipeline_mode<synchronous>, transform_indices = @transform_4, window_bounds = array<i64: 1, 128>}, {pipeline_mode = #tpu.pipeline_mode<synchronous>, transform_indices = @transform_5, window_bounds = array<i64: 128, 16>}, {pipeline_mode = #tpu.pipeline_mode<synchronous>, transform_indices = @transform_6, window_bounds = array<i64: 1, 16>}, {transform_indices = @transform_7, window_bounds = array<i64: 16, 16>}]} {
    %c0 = arith.constant 0 : index
    %c0_0 = arith.constant 0 : index
    %0 = vector.load %arg1[%c0, %c0_0] : memref<16x32xf32, #tpu.memory_space<vmem>>, vector<16x32xf32>
    %1 = arith.truncf %0 : vector<16x32xf32> to vector<16x32xbf16>
    %c0_1 = arith.constant 0 : index
    %c0_2 = arith.constant 0 : index
    %2 = vector.load %arg2[%c0_1, %c0_2] : memref<32x128xbf16, #tpu.memory_space<vmem>>, vector<32x128xbf16>
    %cst = arith.constant dense<0.000000e+00> : vector<16x128xf32>
    %3 = tpu.matmul %1, %2, %cst {dimension_numbers = #tpu.dot_dimension_numbers<[1], [0], [0], [1], [0, 0, 1, 1], [], []>} : vector<16x32xbf16>, vector<32x128xbf16>, vector<16x128xf32> -> vector<16x128xf32>
    %c0_3 = arith.constant 0 : index
    %c0_4 = arith.constant 0 : index
    %4 = vector.load %arg3[%c0_3, %c0_4] : memref<1x128xf32, #tpu.memory_space<vmem>>, vector<1x128xf32>
    %5 = vector.broadcast %4 : vector<1x128xf32> to vector<16x128xf32>
    %6 = arith.addf %3, %5 : vector<16x128xf32>
    %7 = arith.truncf %6 : vector<16x128xf32> to vector<16x128xbf16>
    %cst_5 = arith.constant 0.000000e+00 : bf16
    %8 = vector.broadcast %cst_5 : bf16 to vector<16x128xbf16>
    %9 = arith.cmpf ogt, %7, %8 : vector<16x128xbf16>
    %cst_6 = arith.constant 2.001950e-01 : bf16
    %10 = vector.broadcast %cst_6 : bf16 to vector<16x128xbf16>
    %11 = arith.mulf %10, %7 : vector<16x128xbf16>
    %12 = arith.select %9, %7, %11 : vector<16x128xi1>, vector<16x128xbf16>
    %c0_7 = arith.constant 0 : index
    %c0_8 = arith.constant 0 : index
    %13 = vector.load %arg4[%c0_7, %c0_8] : memref<128x128xbf16, #tpu.memory_space<vmem>>, vector<128x128xbf16>
    %cst_9 = arith.constant dense<0.000000e+00> : vector<16x128xf32>
    %14 = tpu.matmul %12, %13, %cst_9 {dimension_numbers = #tpu.dot_dimension_numbers<[1], [0], [0], [1], [0, 0, 1, 1], [], []>} : vector<16x128xbf16>, vector<128x128xbf16>, vector<16x128xf32> -> vector<16x128xf32>
    %c0_10 = arith.constant 0 : index
    %c0_11 = arith.constant 0 : index
    %15 = vector.load %arg5[%c0_10, %c0_11] : memref<1x128xf32, #tpu.memory_space<vmem>>, vector<1x128xf32>
    %16 = vector.broadcast %15 : vector<1x128xf32> to vector<16x128xf32>
    %17 = arith.addf %14, %16 : vector<16x128xf32>
    %18 = arith.truncf %17 : vector<16x128xf32> to vector<16x128xbf16>
    %cst_12 = arith.constant 0.000000e+00 : bf16
    %19 = vector.broadcast %cst_12 : bf16 to vector<16x128xbf16>
    %20 = arith.cmpf ogt, %18, %19 : vector<16x128xbf16>
    %cst_13 = arith.constant 2.001950e-01 : bf16
    %21 = vector.broadcast %cst_13 : bf16 to vector<16x128xbf16>
    %22 = arith.mulf %21, %18 : vector<16x128xbf16>
    %23 = arith.select %20, %18, %22 : vector<16x128xi1>, vector<16x128xbf16>
    %c0_14 = arith.constant 0 : index
    %c0_15 = arith.constant 0 : index
    %24 = vector.load %arg6[%c0_14, %c0_15] : memref<128x16xbf16, #tpu.memory_space<vmem>>, vector<128x16xbf16>
    %cst_16 = arith.constant dense<0.000000e+00> : vector<16x16xf32>
    %25 = tpu.matmul %23, %24, %cst_16 {dimension_numbers = #tpu.dot_dimension_numbers<[1], [0], [0], [1], [0, 0, 1, 1], [], []>} : vector<16x128xbf16>, vector<128x16xbf16>, vector<16x16xf32> -> vector<16x16xf32>
    %c0_17 = arith.constant 0 : index
    %c0_18 = arith.constant 0 : index
    %26 = vector.load %arg7[%c0_17, %c0_18] : memref<1x16xf32, #tpu.memory_space<vmem>>, vector<1x16xf32>
    %27 = vector.broadcast %26 : vector<1x16xf32> to vector<16x16xf32>
    %28 = arith.addf %25, %27 : vector<16x16xf32>
    %c0_19 = arith.constant 0 : index
    %c0_20 = arith.constant 0 : index
    %29 = vector.load %arg8[%c0_19, %c0_20] : memref<16x16xf32, #tpu.memory_space<vmem>>, vector<16x16xf32>
    tpu.vector_store %arg8[%c0_19, %c0_20], %28 {strides = array<i32>} : memref<16x16xf32, #tpu.memory_space<vmem>>, vector<16x16xf32>,
    return
  }
  func.func @transform_0(%arg0: i32) -> (i32, i32) {
    %c0_i32 = arith.constant 0 : i32
    %c0_i32_0 = arith.constant 0 : i32
    return %arg0, %c0_i32 : i32, i32
  }
  func.func @transform_1(%arg0: i32) -> (i32, i32) {
    %c0_i32 = arith.constant 0 : i32
    %c0_i32_0 = arith.constant 0 : i32
    %c0_i32_1 = arith.constant 0 : i32
    return %c0_i32, %c0_i32_0 : i32, i32
  }
  func.func @transform_2(%arg0: i32) -> (i32, i32) {
    %c0_i32 = arith.constant 0 : i32
    %c0_i32_0 = arith.constant 0 : i32
    %c0_i32_1 = arith.constant 0 : i32
    return %c0_i32, %c0_i32_0 : i32, i32
  }
  func.func @transform_3(%arg0: i32) -> (i32, i32) {
    %c0_i32 = arith.constant 0 : i32
    %c0_i32_0 = arith.constant 0 : i32
    %c0_i32_1 = arith.constant 0 : i32
    return %c0_i32, %c0_i32_0 : i32, i32
  }
  func.func @transform_4(%arg0: i32) -> (i32, i32) {
    %c0_i32 = arith.constant 0 : i32
    %c0_i32_0 = arith.constant 0 : i32
    %c0_i32_1 = arith.constant 0 : i32
    return %c0_i32, %c0_i32_0 : i32, i32
  }
  func.func @transform_5(%arg0: i32) -> (i32, i32) {
    %c0_i32 = arith.constant 0 : i32
    %c0_i32_0 = arith.constant 0 : i32
    %c0_i32_1 = arith.constant 0 : i32
    return %c0_i32, %c0_i32_0 : i32, i32
  }
  func.func @transform_6(%arg0: i32) -> (i32, i32) {
    %c0_i32 = arith.constant 0 : i32
    %c0_i32_0 = arith.constant 0 : i32
    %c0_i32_1 = arith.constant 0 : i32
    return %c0_i32, %c0_i32_0 : i32, i32
  }
  func.func @transform_7(%arg0: i32) -> (i32, i32) {
    %c0_i32 = arith.constant 0 : i32
    %c0_i32_0 = arith.constant 0 : i32
    return %arg0, %c0_i32 : i32, i32
  }
}

</mosaic_0001>

<bundles_post_ra>
// kernel: predictor_forward.1
= control target key start
LH: loop header
LB: loop body
LE: loop exit
PB: predicated region body
PF: predicated region fallthrough
CT: control target
= control target key end

     0   :  { %v449_v0 = vmov 0.0   ;;  %vm450_vm0 = vmmov 0   ;;  %vm54_vm1 = vcmask 261120   ;;  %vm331_vm4 = vcmask 130048   ;;  %s590_s1 = inlined_call_operand.vmem [shape: bf16[32,128], index: 1, kind: input, shape index: {}]   ;;  %s591_s0 = inlined_call_operand.vmem [shape: f32[16,32], index: 0, kind: input, shape index: {}]   ;;  %s592_s3 = inlined_call_operand.vmem [shape: bf16[128,128], index: 3, kind: input, shape index: {}]   ;;  %s593_s5 = inlined_call_operand.vmem [shape: bf16[128,16], index: 5, kind: input, shape index: {}]   ;;  %s594_s2 = inlined_call_operand.vmem [shape: f32[1,128], index: 2, kind: input, shape index: {}]   ;;  %s595_s4 = inlined_call_operand.vmem [shape: f32[1,128], index: 4, kind: input, shape index: {}]   ;;  %s596_s6 = inlined_call_operand.vmem [shape: f32[1,16], index: 6, kind: input, shape index: {}]   ;;  %s597_s7 = inlined_call_operand.vmem [shape: f32[16,16], index: 7, kind: output, shape index: {}]  }
   0x1   :  { %381 = vmatprep.subr.bf16.mxu0 %v449_v0  ;;  %v431_v1 = vld [vmem:[%s590_s1 + $0x8] sm:$0xff]   ;;  %385 = vmatprep.mubr.msk.bf16.mxu0 %vm450_vm0, %v449_v0  ;;  %v432_v2 = vld [vmem:[%s590_s1] sm:$0xff]   ;;  %v433_v5 = vld [vmem:[%s592_s3 + $0x38] sm:$0xff]  }
   0x2   :  { %389 = vmatprep.subr.bf16.mxu1 %v449_v0  ;;  %405 = vmatprep.mubr.msk.bf16.mxu1 %vm450_vm0, %v449_v0  ;;  %v28_v3 = vld [vmem:[%s591_s0] sm:$0xff]  ;;  %v29_v4 = vld [vmem:[%s591_s0 + $0x8] sm:$0xff]  ;;  %v434_v7 = vld [vmem:[%s592_s3 + $0x30] sm:$0xff]  }
   0x3   :  { %382 = vmatpush3.bf16.msra.mxu0 %v431_v1  ;;  %v30_v6 = vpack.c.bf16 %v29_v4, %v28_v3  ;;  %390 = vmatpush3.bf16.msra.mxu1 %v433_v5  ;;  %v435_v8 = vld [vmem:[%s592_s3 + $0x28] sm:$0xff]   ;;  %v436_v9 = vld [vmem:[%s592_s3 + $0x20] sm:$0xff]   ;;  %v437_v10 = vld [vmem:[%s592_s3 + $0x18] sm:$0xff]  }
   0x4   :  { %383 = vmatprep.subr.bf16.mxu0 %v449_v0  ;;  %391 = vmatprep.subr.bf16.mxu1 %v449_v0  ;;  %v438_v11 = vld [vmem:[%s592_s3 + $0x10] sm:$0xff]   ;;  %v439_v12 = vld [vmem:[%s592_s3 + $0x8] sm:$0xff]   ;;  %v440_v13 = vld [vmem:[%s592_s3] sm:$0xff]  }
   0x5   :  { %v441_v14 = vld [vmem:[%s593_s5 + $0x38] sm:$0xff]   ;;  %v442_v15 = vld [vmem:[%s593_s5 + $0x30] sm:$0xff]   ;;  %v443_v16 = vld [vmem:[%s593_s5 + $0x28] sm:$0xff]  }
   0x6   :  { %v444_v17 = vld [vmem:[%s593_s5 + $0x20] sm:$0xff]   ;;  %v445_v18 = vld [vmem:[%s593_s5 + $0x18] sm:$0xff]   ;;  %v446_v29 = vld [vmem:[%s593_s5 + $0x10] sm:$0xff]  }
   0x7   :  { %384 = vmatpush3.bf16.msra.mxu0 %v432_v2  ;;  %392 = vmatpush3.bf16.msra.mxu1 %v434_v7  ;;  %v338_v20 = vld [vmem:[%s594_s2] ss:$0 sm:$0xff]  ;;  %v447_v30 = vld [vmem:[%s593_s5 + $0x8] sm:$0xff]  }
   0x8   :  { %409 = vmatprep.subr.bf16.mxu0 %v449_v0  ;;  %393 = vmatprep.subr.bf16.mxu1 %v449_v0  ;;  %v448_v31 = vld [vmem:[%s593_s5] sm:$0xff]  }
   0x9   :  { %v342_v33 = vld [vmem:[%s595_s4] ss:$0 sm:$0xff] }
   0xa   :  { %386 = vmatmul.mubr.msk.bf16.vlgmr.msra.gmra.mxu0 %vm54_vm1, %v30_v6  ;;  %v351_v42 = vld [vmem:[%s596_s6] ss:$0 sm:$0xff] }
   0xb   :  { %425 = vmatprep.mubr.msk.bf16.mxu0 %vm450_vm0, %v449_v0  ;;  %394 = vmatpush3.bf16.msra.mxu1 %v435_v8 }
   0xc   :  { %395 = vmatprep.subr.bf16.mxu1 %v449_v0  ;;  %410 = vmatpush3.bf16.msra.mxu0 %v441_v14 }
   0xd   :  { %411 = vmatprep.subr.bf16.mxu0 %v449_v0 }
   0xf   :  { %396 = vmatpush3.bf16.msra.mxu1 %v436_v9 }
  0x10   :  { %397 = vmatprep.subr.bf16.mxu1 %v449_v0  ;;  %412 = vmatpush3.bf16.msra.mxu0 %v442_v15 }
  0x11   :  { %413 = vmatprep.subr.bf16.mxu0 %v449_v0 }
  0x13   :  { %398 = vmatpush3.bf16.msra.mxu1 %v437_v10 }
  0x14   :  { %399 = vmatprep.subr.bf16.mxu1 %v449_v0  ;;  %414 = vmatpush3.bf16.msra.mxu0 %v443_v16 }
  0x15   :  { %415 = vmatprep.subr.bf16.mxu0 %v449_v0 }
  0x17   :  { %400 = vmatpush3.bf16.msra.mxu1 %v438_v11 }
  0x18   :  { %401 = vmatprep.subr.bf16.mxu1 %v449_v0  ;;  %416 = vmatpush3.bf16.msra.mxu0 %v444_v17 }
  0x19   :  { %417 = vmatprep.subr.bf16.mxu0 %v449_v0 }
  0x1b   :  { %402 = vmatpush3.bf16.msra.mxu1 %v439_v12 }
  0x1c   :  { %403 = vmatprep.subr.bf16.mxu1 %v449_v0  ;;  %418 = vmatpush3.bf16.msra.mxu0 %v445_v18 }
  0x1d   :  { %419 = vmatprep.subr.bf16.mxu0 %v449_v0 }
  0x1f   :  { %404 = vmatpush3.bf16.msra.mxu1 %v440_v13 }
  0x20   :  { %420 = vmatpush3.bf16.msra.mxu0 %v446_v29 }
  0x21   :  { %421 = vmatprep.subr.bf16.mxu0 %v449_v0 }
  0x24   :  { %422 = vmatpush3.bf16.msra.mxu0 %v447_v30 }
  0x25   :  { %423 = vmatprep.subr.bf16.mxu0 %v449_v0 }
  0x28   :  { %424 = vmatpush3.bf16.msra.mxu0 %v448_v31 }
  0xca   :  { %v92_v19 = vpop.f32.mrf.mxu0 }
  0xcb   :  { %v93_v23 = vadd.f32 %v338_v20, %v92_v19 }
  0xcc   :  { %v387_v21 = vpop.f32.mrf.mxu0 }
  0xce   :  { %v95_v22 = vpop.f32.mrf.mxu0 }
  0xcf   :  { %v96_v24 = vadd.f32 %v338_v20, %v95_v22 }
  0xd0   :  { %v388_v25 = vpop.f32.mrf.mxu0 }
  0xd1   :  { %v99_v26 = vpack.c.bf16 %v96_v24, %v93_v23 }
  0xd3   :  { %vm100_vm2 = vcmp.gt.bf16.partialorder %v99_v26, 0  ;;  %v101_v27 = vmul.bf16 1045249613, %v99_v26 }
  0xd5   :  { %v102_v28 = vsel %vm100_vm2, %v99_v26, %v101_v27 }
  0xd6   :  { %406 = vmatmul.mubr.bf16.vlgmr.msra.gmra.mxu1 %v102_v28 }
 0x196   :  { %v208_v32 = vpop.f32.mrf.mxu1 }
 0x197   :  { %v209_v36 = vadd.f32 %v342_v33, %v208_v32 }
 0x198   :  { %v407_v34 = vpop.f32.mrf.mxu1 }
 0x19a   :  { %v211_v35 = vpop.f32.mrf.mxu1 }
 0x19b   :  { %v212_v37 = vadd.f32 %v342_v33, %v211_v35 }
 0x19c   :  { %v408_v38 = vpop.f32.mrf.mxu1 }
 0x19d   :  { %v215_v39 = vpack.c.bf16 %v212_v37, %v209_v36 }
 0x19f   :  { %v217_v40 = vmul.bf16 1045249613, %v215_v39  ;;  %vm216_vm3 = vcmp.gt.bf16.partialorder %v215_v39, 0 }
 0x1a1   :  { %v218_v41 = vsel %vm216_vm3, %v215_v39, %v217_v40 }
 0x1a2   :  { %426 = vmatmul.mubr.bf16.vlgmr.msra.gmra.mxu0 %v218_v41 }
 0x262   :  { %v324_v43 = vpop.f32.mrf.mxu0 }
 0x263   :  { %v325_v44 = vadd.f32 %v351_v42, %v324_v43 }
 0x264   :  { %v427_v45 = vpop.f32.mrf.mxu0 }
 0x265   :  { %332 = vst.msk [vmem:[%s597_s7] sm:$0xff] %vm331_vm4, %v325_v44 }
 0x266   :  { %v327_v46 = vpop.f32.mrf.mxu0 }
 0x267   :  { %v328_v47 = vadd.f32 %v351_v42, %v327_v46 }
 0x268   :  { %v428_v48 = vpop.f32.mrf.mxu0 }
 0x269   :  { %333 = vst.msk [vmem:[%s597_s7 + $0x8] sm:$0xff] %vm331_vm4, %v328_v47 }

</bundles_post_ra>
